<compile_context>
chip_gen: v7x
topology: tpu7x:2x2x1
jax: 0.10.0
libtpu: 0.0.40
codegen_flags: <defaults>
</compile_context>

<pallas_src>
import functools

import jax
import jax.numpy as jnp
from jax.experimental import pallas as pl
from jax.experimental.pallas import tpu as pltpu

LANE = 128
SUBLANE = 8


def _logreg_kernel(wb_ref, x_ref, o_ref):
    # wb_ref: (2,) f32 in SMEM  -> [weight, bias] scalars
    # x_ref : (T, 128) f32 tile of the flattened batch
    # o_ref : (T, 128) f32 tile of the output
    w = wb_ref[0]
    b = wb_ref[1]
    z = x_ref[...] * w + b                              # VPU mul/add
    # sigmoid pinned to 2 EUP ops per element: exp + approx reciprocal.
    o_ref[...] = pl.reciprocal(1.0 + jnp.exp(-z), approx=True)


@functools.partial(
    jax.jit,
    static_argnames=("block_rows", "force_pallas", "min_pallas_elems"))
def logic_regression_forward(x, weight, bias, *, block_rows=8192,
                             force_pallas=False, min_pallas_elems=16384):
    """Forward pass of LogicRegressionModel for input_dim = output_dim = 1.

    x:      (N, 1) float32
    weight: (1, 1) float32   (nn.Linear weight)
    bias:   (1,)   float32   (nn.Linear bias)
    returns (N, 1) float32 = sigmoid(x @ weight.T + bias)
    """
    assert weight.shape == (1, 1) and bias.shape == (1,)
    n = x.shape[0]
    w = weight.reshape(()).astype(jnp.float32)
    b = bias.reshape(()).astype(jnp.float32)

    # Small-batch fast path: fused XLA elementwise beats kernel-launch + DMA
    # setup when the useful HBM traffic is far below a microsecond.
    if (not force_pallas) and n < min_pallas_elems:
        return jax.nn.sigmoid(x.astype(jnp.float32) * w + b)

    # Flatten batch to a lane-dense slab: (rows_min, 128) f32, padded only to
    # the minimal 8x128 (1024-element) boundary — no tile-multiple rounding.
    flat = x.reshape(-1).astype(jnp.float32)            # (N,)
    rows_needed = -(-n // LANE)                         # ceil(N / 128)
    rows_min = -(-rows_needed // SUBLANE) * SUBLANE     # multiple of 8
    padded_elems = rows_min * LANE
    needs_pad = padded_elems != n
    if needs_pad:
        flat = jnp.pad(flat, (0, padded_elems - n))
    slab = flat.reshape(rows_min, LANE)

    # Tile the batch rows; the last grid block may be partial (Pallas masks it).
    block_rows = -(-block_rows // SUBLANE) * SUBLANE    # keep multiple of 8
    tile_rows = min(block_rows, rows_min)               # multiple of 8
    num_tiles = pl.cdiv(rows_min, tile_rows)

    # Scalars for SMEM: [w, b].
    wb = jnp.stack([w, b])

    out_slab = pl.pallas_call(
        _logreg_kernel,
        out_shape=jax.ShapeDtypeStruct((rows_min, LANE), jnp.float32),
        grid=(num_tiles,),
        in_specs=[
            pl.BlockSpec(memory_space=pltpu.MemorySpace.SMEM),   # wb scalars
            pl.BlockSpec((tile_rows, LANE), lambda i: (i, 0)),   # x tile
        ],
        out_specs=pl.BlockSpec((tile_rows, LANE), lambda i: (i, 0)),
        compiler_params=pltpu.CompilerParams(
            dimension_semantics=("parallel",),          # 2 TCs split grid on v7x
            vmem_limit_bytes=32 * 1024 * 1024),         # room for 4 MiB tiles
    )(wb, slab)

    if needs_pad:
        # Only the ragged case pays the trim pass.
        return out_slab.reshape(-1)[:n].reshape(n, 1)
    return out_slab.reshape(n, 1)


if __name__ == "__main__":
    input_dim = 1
    output_dim = 1

    key = jax.random.PRNGKey(0)
    kx1, kx2, kx3, kw, kb = jax.random.split(key, 5)

    # Deterministic parameter init mimicking nn.Linear's U(-1/sqrt(fan_in), ..)
    bound = 1.0 / (input_dim ** 0.5)
    weight = jax.random.uniform(kw, (output_dim, input_dim), jnp.float32,
                                minval=-bound, maxval=bound)
    bias = jax.random.uniform(kb, (output_dim,), jnp.float32,
                              minval=-bound, maxval=bound)

    def ref_fwd(xx):
        return jax.nn.sigmoid(xx @ weight.T + bias)

    # 1) Tiny batch forced through the Pallas path (single padded 8x128 tile).
    n1 = 8
    x1 = jax.random.normal(kx1, (n1, input_dim), jnp.float32)
    out1 = jax.block_until_ready(
        logic_regression_forward(x1, weight, bias,
                                 block_rows=8, force_pallas=True))
    assert out1.shape == (n1, output_dim)
    assert jnp.allclose(out1, ref_fwd(x1), atol=2e-3, rtol=2e-3)

    # 2) Ragged batch, multi-tile grid with a partial (masked) last block
    #    plus the gated output trim.
    n2 = 3000
    x2 = jax.random.normal(kx2, (n2, input_dim), jnp.float32)
    out2 = jax.block_until_ready(
        logic_regression_forward(x2, weight, bias,
                                 block_rows=16, force_pallas=True))
    assert out2.shape == (n2, output_dim)
    assert jnp.allclose(out2, ref_fwd(x2), atol=2e-3, rtol=2e-3)

    # 3) 1024-aligned batch: no pad and no trim (zero extra HBM passes).
    n3 = 4096
    x3 = jax.random.normal(kx3, (n3, input_dim), jnp.float32)
    out3 = jax.block_until_ready(
        logic_regression_forward(x3, weight, bias, force_pallas=True))
    assert out3.shape == (n3, output_dim)
    assert jnp.allclose(out3, ref_fwd(x3), atol=2e-3, rtol=2e-3)

    # 4) Default auto path for a tiny batch -> fused jnp fast path.
    out4 = jax.block_until_ready(logic_regression_forward(x1, weight, bias))
    assert out4.shape == (n1, output_dim)
    assert jnp.allclose(out4, ref_fwd(x1), atol=1e-6, rtol=1e-6)

    print("KERNEL_OK")
</pallas_src>

<mosaic_0001>
module attributes {stable_mosaic.version = 11 : i64} {
  func.func @_logreg_kernel(%arg0: i32, %arg1: memref<2xf32, #tpu.memory_space<smem>>, %arg2: memref<8x128xf32, #tpu.memory_space<vmem>>, %arg3: memref<8x128xf32, #tpu.memory_space<vmem>>) attributes {dimension_semantics = [#tpu.dimension_semantics<parallel>], iteration_bounds = array<i64: 1>, scalar_prefetch = 0 : i64, scratch_operands = 0 : i64, tpu.core_type = #tpu.core_type<tc>, window_params = [{transform_indices = @transform_0, window_bounds = array<i64: 2>}, {transform_indices = @transform_1, window_bounds = array<i64: 8, 128>}, {transform_indices = @transform_2, window_bounds = array<i64: 8, 128>}]} {
    %c0 = arith.constant 0 : index
    %0 = memref.load %arg1[%c0] : memref<2xf32, #tpu.memory_space<smem>>
    %c1 = arith.constant 1 : index
    %1 = memref.load %arg1[%c1] : memref<2xf32, #tpu.memory_space<smem>>
    %c0_0 = arith.constant 0 : index
    %c0_1 = arith.constant 0 : index
    %2 = vector.load %arg2[%c0_0, %c0_1] : memref<8x128xf32, #tpu.memory_space<vmem>>, vector<8x128xf32>
    %3 = vector.broadcast %0 : f32 to vector<8x128xf32>
    %4 = arith.mulf %2, %3 : vector<8x128xf32>
    %5 = vector.broadcast %1 : f32 to vector<8x128xf32>
    %6 = arith.addf %4, %5 : vector<8x128xf32>
    %cst = arith.constant 0.000000e+00 : f32
    %7 = vector.broadcast %cst : f32 to vector<8x128xf32>
    %8 = arith.subf %7, %6 : vector<8x128xf32>
    %9 = math.exp %8 : vector<8x128xf32>
    %cst_2 = arith.constant 1.000000e+00 : f32
    %10 = vector.broadcast %cst_2 : f32 to vector<8x128xf32>
    %11 = arith.addf %10, %9 : vector<8x128xf32>
    %12 = tpu.reciprocal %11 {approx = true} : vector<8x128xf32> -> vector<8x128xf32>
    %c0_3 = arith.constant 0 : index
    %c0_4 = arith.constant 0 : index
    %13 = vector.load %arg3[%c0_3, %c0_4] : memref<8x128xf32, #tpu.memory_space<vmem>>, vector<8x128xf32>
    tpu.vector_store %arg3[%c0_3, %c0_4], %12 {strides = array<i32>} : memref<8x128xf32, #tpu.memory_space<vmem>>, vector<8x128xf32>,
    return
  }
  func.func @transform_0(%arg0: i32) -> i32 {
    %c0_i32 = arith.constant 0 : i32
    %c0_i32_0 = arith.constant 0 : i32
    return %c0_i32 : i32
  }
  func.func @transform_1(%arg0: i32) -> (i32, i32) {
    %c0_i32 = arith.constant 0 : i32
    %c0_i32_0 = arith.constant 0 : i32
    return %arg0, %c0_i32 : i32, i32
  }
  func.func @transform_2(%arg0: i32) -> (i32, i32) {
    %c0_i32 = arith.constant 0 : i32
    %c0_i32_0 = arith.constant 0 : i32
    return %arg0, %c0_i32 : i32, i32
  }
}

</mosaic_0001>

<bundles_post_ra>
// kernel: logic_regression_forward.1
= control target key start
LH: loop header
LB: loop body
LE: loop exit
PB: predicated region body
PF: predicated region fallthrough
CT: control target
= control target key end

     0   :  { %7 = vsyncpa [#allocation3], 0  ;;  %s87_s0 = inlined_call_operand.vmem [shape: f32[2], index: 0, kind: input, shape index: {}]   ;;  %s88_s1 = inlined_call_operand.vmem [shape: f32[8,128], index: 1, kind: input, shape index: {}]   ;;  %s89_s2 = inlined_call_operand.vmem [shape: f32[8,128], index: 2, kind: output, shape index: {}]  }
   0x1   :  { %s14_s11 = sshll.u32 %s87_s0, 4  ;;  %s15_s11 = int_to_ptr.vmem [resolvable:$true] %s14_s11 }
   0x2   :  { %s48_s12 = scalar_lea.vmem %s15_s11, 16  ;;  %p53_p1 = scmp.lt.s32.totalorder %s15_s11, %s15_s11 }
   0x3   :  { %p49_p0 = scmp.ne.s32.totalorder %s15_s11, %s48_s12  ;;  %p54_p2 = scmp.lt.s32.totalorder %s48_s12, %s48_s12 }
   0x5   :  { %p55_p3 = por %p54_p2, %p53_p1 }
   0x7   :  { %p56_p4 = pnand %p55_p3, %p49_p0 }
   0x9   :  { %59 = shalt.err (!%p56_p4)
}
   0xa   :  { %s62_s13 = smov [#allocation2]  }
   0xb   :  { %17 = dma.vmem_to_smem %s15_s11, 16, %s62_s13, [#allocation3]  }
   0xc   :  { %60 = dma.done.wait [#allocation3], 16  }
   0xd   :  { %61 = vsyncadd [#allocation3], 4294967280 }
   0xe   :  { %23 = sfence }
   0xf   :  { %s24_s14 = sld [smem:[#allocation2]]  ;;  %s42_s15 = sld [smem:[#allocation2 + $0x1]]  ;;  %v26_v0 = vld [vmem:[%s88_s1] sm:$0xff] }
  0x15   :  { %v27_v1 = vstv %s24_s14  ;;  %v29_v2 = vstv %s42_s15 }
  0x16   :  { %v28_v3 = vmul.f32 %v27_v1, %v26_v0 }
  0x18   :  { %v30_v4 = vadd.f32 %v29_v2, %v28_v3 }
  0x1a   :  { %v31_v5 = vsub.f32 0.0, %v30_v4 }
  0x1c   :  { %v32_v6 = vmul.f32 1.442695, %v31_v5 }
  0x1e   :  { %44 = vpow2.f32 %v32_v6 }
  0x28   :  { %v45_v7 = vpop.eup %44 }
  0x29   :  { %v34_v8 = vadd.f32 1.0, %v45_v7 }
  0x2b   :  { %46 = vrcp.f32 %v34_v8 }
  0x35   :  { %v47_v9 = vpop.eup %46 }
  0x36   :  { %36 = vst [vmem:[%s89_s2] sm:$0xff] %v47_v9 }
  0x37   :  { %41 = vsyncpa [#allocation3], 1 }

</bundles_post_ra>
